<compile_context>
chip_gen: v7x
topology: tpu7x:2x2x1
jax: 0.10.0
libtpu: 0.0.40
codegen_flags: <defaults>
</compile_context>

<pallas_src>
import jax
import jax.numpy as jnp
from jax.experimental import pallas as pl
from jax.experimental.pallas import tpu as pltpu

# Small synthetic shapes consistent with the module.
B, S, D = 2, 8, 32        # batch, seq, d_model (== EncoderLayer.size)
H = 4                     # attention heads
DK = D // H               # per-head dim
DFF = 64                  # feed-forward hidden dim
EPS = 1e-6
BS = B * S


def _layernorm(v, a, b):
    # v: (BS, D); a, b: (1, D)
    mean = jnp.mean(v, axis=-1, keepdims=True)
    var = jnp.sum((v - mean) ** 2, axis=-1, keepdims=True) / (v.shape[-1] - 1)  # ddof=1
    std = jnp.sqrt(var)
    return a * (v - mean) / (std + EPS) + b


def encoder_layer_kernel(xf_ref, bias_ref,
                         wqkv_ref, bqkv_ref, wo_ref, bo_ref,
                         w1_ref, c1_ref, w2_ref, c2_ref,
                         a1_ref, g1_ref, a2_ref, g2_ref,
                         o_ref):
    xf = xf_ref[...]                 # (B*S, D)  all batches, flattened
    bias = bias_ref[...]             # (B, 1, S) additive mask bias: 0 keep / -1e9 masked

    # ---- sublayer 0: pre-norm multi-head self-attention + residual ----
    xn = _layernorm(xf, a1_ref[...], g1_ref[...])

    # Fused QKV projection: single (B*S, D) @ (D, 3D) matmul + single bias add.
    qkv = jnp.dot(xn, wqkv_ref[...], preferred_element_type=jnp.float32) + bqkv_ref[...]
    scale = 1.0 / jnp.sqrt(jnp.float32(DK))
    q = qkv[:, :D] * scale           # fold 1/sqrt(dk) into q once (not per-score-tile)
    k = qkv[:, D:2 * D]
    v = qkv[:, 2 * D:3 * D]

    # Residual + output-projection bias; the per-head output projections are
    # accumulated into this, which removes the lane-axis concat of head outputs.
    acc = xf + bo_ref[...]

    for h in range(H):               # static unrolled loop over heads (lane slices)
        lo = h * DK
        # Leading-dim-only reshapes (minor dim DK unchanged) -> no lane relayout.
        qh = q[:, lo:lo + DK].reshape(B, S, DK)
        kh = k[:, lo:lo + DK].reshape(B, S, DK)
        vh = v[:, lo:lo + DK].reshape(B, S, DK)

        s = jnp.einsum('bqd,bkd->bqk', qh, kh,
                       preferred_element_type=jnp.float32)      # (B, S, S)
        s = s + bias                                            # additive mask
        s = s - jnp.max(s, axis=-1, keepdims=True)
        p = jnp.exp(s)
        p = p * pl.reciprocal(jnp.sum(p, axis=-1, keepdims=True), approx=True)

        ctx = jnp.einsum('bqk,bkd->bqd', p, vh,
                         preferred_element_type=jnp.float32)    # (B, S, DK)
        # Output projection contribution of this head: W_O row block is a cheap
        # sublane slice; summing over heads == concat(heads) @ W_O.
        acc = acc + jnp.dot(ctx.reshape(BS, DK), wo_ref[lo:lo + DK, :],
                            preferred_element_type=jnp.float32)

    x1 = acc                          # x + SelfAttn(LN(x)) + b_O

    # ---- sublayer 1: pre-norm position-wise feed-forward + residual ----
    xn2 = _layernorm(x1, a2_ref[...], g2_ref[...])
    h1 = jnp.maximum(
        jnp.dot(xn2, w1_ref[...], preferred_element_type=jnp.float32) + c1_ref[...], 0.0)
    ff = jnp.dot(h1, w2_ref[...], preferred_element_type=jnp.float32) + c2_ref[...]

    o_ref[...] = x1 + ff


def encoder_layer(x, mask, params):
    (wq, bq, wk, bk, wv, bv, wo, bo, w1, c1, w2, c2, a1, g1, a2, g2) = params

    # Wrapper-side (XLA) prep: fuse QKV weights, flatten batch*seq, build additive mask.
    wqkv = jnp.concatenate([wq, wk, wv], axis=1)          # (D, 3D)
    bqkv = jnp.concatenate([bq, bk, bv], axis=1)          # (1, 3D)
    xf = x.reshape(BS, D)
    bias = (mask - 1.0) * jnp.float32(1e9)                # 1 -> 0 keep, 0 -> -1e9 masked

    inputs = (xf, bias, wqkv, bqkv, wo, bo, w1, c1, w2, c2, a1, g1, a2, g2)
    # Single grid step: every array is one full-extent block resident in VMEM.
    in_specs = [pl.BlockSpec(a.shape, lambda i, n=a.ndim: (0,) * n) for a in inputs]

    out = pl.pallas_call(
        encoder_layer_kernel,
        out_shape=jax.ShapeDtypeStruct((BS, D), jnp.float32),
        grid=(1,),
        in_specs=in_specs,
        out_specs=pl.BlockSpec((BS, D), lambda i: (0, 0)),
        compiler_params=pltpu.CompilerParams(dimension_semantics=("arbitrary",)),
    )(*inputs)
    return out.reshape(B, S, D)


def encoder_layer_ref(x, mask, params):
    # Pure-JAX reference reproducing the PyTorch forward semantics exactly.
    (wq, bq, wk, bk, wv, bv, wo, bo, w1, c1, w2, c2, a1, g1, a2, g2) = params

    def ln(v, a, b):
        mean = v.mean(-1, keepdims=True)
        std = jnp.sqrt(((v - mean) ** 2).sum(-1, keepdims=True) / (v.shape[-1] - 1))
        return a * (v - mean) / (std + EPS) + b

    xn = ln(x, a1, g1)
    q, k, v = xn @ wq + bq, xn @ wk + bk, xn @ wv + bv
    split = lambda t: t.reshape(B, S, H, DK).transpose(0, 2, 1, 3)
    qh, kh, vh = split(q), split(k), split(v)
    scores = jnp.einsum('bhqd,bhkd->bhqk', qh, kh) / jnp.sqrt(jnp.float32(DK))
    scores = jnp.where(mask[:, None, :, :] == 0.0, -1e9, scores)
    p = jax.nn.softmax(scores, axis=-1)
    attn = jnp.einsum('bhqk,bhkd->bhqd', p, vh).transpose(0, 2, 1, 3).reshape(B, S, D)
    x1 = x + (attn @ wo + bo)
    xn2 = ln(x1, a2, g2)
    return x1 + (jnp.maximum(xn2 @ w1 + c1, 0.0) @ w2 + c2)


def init_params(key):
    ks = jax.random.split(key, 6)
    sd = 0.1
    wq = sd * jax.random.normal(ks[0], (D, D), jnp.float32)
    wk = sd * jax.random.normal(ks[1], (D, D), jnp.float32)
    wv = sd * jax.random.normal(ks[2], (D, D), jnp.float32)
    wo = sd * jax.random.normal(ks[3], (D, D), jnp.float32)
    w1 = sd * jax.random.normal(ks[4], (D, DFF), jnp.float32)
    w2 = sd * jax.random.normal(ks[5], (DFF, D), jnp.float32)
    bq = jnp.zeros((1, D), jnp.float32)
    bk = jnp.zeros((1, D), jnp.float32)
    bv = jnp.zeros((1, D), jnp.float32)
    bo = jnp.zeros((1, D), jnp.float32)
    c1 = jnp.zeros((1, DFF), jnp.float32)
    c2 = jnp.zeros((1, D), jnp.float32)
    # LayerNorm params exactly as the module's __init__: ones / zeros.
    a1, g1 = jnp.ones((1, D), jnp.float32), jnp.zeros((1, D), jnp.float32)
    a2, g2 = jnp.ones((1, D), jnp.float32), jnp.zeros((1, D), jnp.float32)
    return (wq, bq, wk, bk, wv, bv, wo, bo, w1, c1, w2, c2, a1, g1, a2, g2)


if __name__ == "__main__":
    key = jax.random.PRNGKey(0)
    kx, kp = jax.random.split(key)
    x = jax.random.normal(kx, (B, S, D), jnp.float32)
    # mask: keep everything for batch 0, mask out the last 2 positions for batch 1.
    mask = jnp.ones((B, 1, S), jnp.float32)
    mask = mask.at[1, 0, S - 2:].set(0.0)

    params = init_params(kp)

    out = jax.block_until_ready(encoder_layer(x, mask, params))
    ref = encoder_layer_ref(x, mask, params)

    assert out.shape == (B, S, D)
    # Tolerance loosened slightly vs 1e-4 to absorb the approximate EUP reciprocal
    # (rel. err ~2^-12) used for the softmax normalization; real bugs are >> 2e-3.
    assert jnp.allclose(out, ref, rtol=2e-3, atol=2e-3), "mismatch vs pure-JAX reference"

    print("KERNEL_OK")
</pallas_src>

<mosaic_0001>
module attributes {stable_mosaic.version = 11 : i64} {
  func.func @encoder_layer_kernel(%arg0: i32, %arg1: memref<16x32xf32, #tpu.memory_space<vmem>>, %arg2: memref<2x1x8xf32, #tpu.memory_space<vmem>>, %arg3: memref<32x96xf32, #tpu.memory_space<vmem>>, %arg4: memref<1x96xf32, #tpu.memory_space<vmem>>, %arg5: memref<32x32xf32, #tpu.memory_space<vmem>>, %arg6: memref<1x32xf32, #tpu.memory_space<vmem>>, %arg7: memref<32x64xf32, #tpu.memory_space<vmem>>, %arg8: memref<1x64xf32, #tpu.memory_space<vmem>>, %arg9: memref<64x32xf32, #tpu.memory_space<vmem>>, %arg10: memref<1x32xf32, #tpu.memory_space<vmem>>, %arg11: memref<1x32xf32, #tpu.memory_space<vmem>>, %arg12: memref<1x32xf32, #tpu.memory_space<vmem>>, %arg13: memref<1x32xf32, #tpu.memory_space<vmem>>, %arg14: memref<1x32xf32, #tpu.memory_space<vmem>>, %arg15: memref<16x32xf32, #tpu.memory_space<vmem>>) attributes {dimension_semantics = [#tpu.dimension_semantics<arbitrary>], iteration_bounds = array<i64: 1>, scalar_prefetch = 0 : i64, scratch_operands = 0 : i64, tpu.core_type = #tpu.core_type<tc>, window_params = [{pipeline_mode = #tpu.pipeline_mode<synchronous>, transform_indices = @transform_0, window_bounds = array<i64: 16, 32>}, {pipeline_mode = #tpu.pipeline_mode<synchronous>, transform_indices = @transform_1, window_bounds = array<i64: 2, 1, 8>}, {pipeline_mode = #tpu.pipeline_mode<synchronous>, transform_indices = @transform_2, window_bounds = array<i64: 32, 96>}, {pipeline_mode = #tpu.pipeline_mode<synchronous>, transform_indices = @transform_3, window_bounds = array<i64: 1, 96>}, {pipeline_mode = #tpu.pipeline_mode<synchronous>, transform_indices = @transform_4, window_bounds = array<i64: 32, 32>}, {pipeline_mode = #tpu.pipeline_mode<synchronous>, transform_indices = @transform_5, window_bounds = array<i64: 1, 32>}, {pipeline_mode = #tpu.pipeline_mode<synchronous>, transform_indices = @transform_6, window_bounds = array<i64: 32, 64>}, {pipeline_mode = #tpu.pipeline_mode<synchronous>, transform_indices = @transform_7, window_bounds = array<i64: 1, 64>}, {pipeline_mode = #tpu.pipeline_mode<synchronous>, transform_indices = @transform_8, window_bounds = array<i64: 64, 32>}, {pipeline_mode = #tpu.pipeline_mode<synchronous>, transform_indices = @transform_9, window_bounds = array<i64: 1, 32>}, {pipeline_mode = #tpu.pipeline_mode<synchronous>, transform_indices = @transform_10, window_bounds = array<i64: 1, 32>}, {pipeline_mode = #tpu.pipeline_mode<synchronous>, transform_indices = @transform_11, window_bounds = array<i64: 1, 32>}, {pipeline_mode = #tpu.pipeline_mode<synchronous>, transform_indices = @transform_12, window_bounds = array<i64: 1, 32>}, {pipeline_mode = #tpu.pipeline_mode<synchronous>, transform_indices = @transform_13, window_bounds = array<i64: 1, 32>}, {pipeline_mode = #tpu.pipeline_mode<synchronous>, transform_indices = @transform_14, window_bounds = array<i64: 16, 32>}]} {
    %c0 = arith.constant 0 : index
    %c0_0 = arith.constant 0 : index
    %0 = vector.load %arg1[%c0, %c0_0] : memref<16x32xf32, #tpu.memory_space<vmem>>, vector<16x32xf32>
    %c0_1 = arith.constant 0 : index
    %c0_2 = arith.constant 0 : index
    %c0_3 = arith.constant 0 : index
    %1 = vector.load %arg2[%c0_1, %c0_2, %c0_3] : memref<2x1x8xf32, #tpu.memory_space<vmem>>, vector<2x1x8xf32>
    %c0_4 = arith.constant 0 : index
    %c0_5 = arith.constant 0 : index
    %2 = vector.load %arg11[%c0_4, %c0_5] : memref<1x32xf32, #tpu.memory_space<vmem>>, vector<1x32xf32>
    %c0_6 = arith.constant 0 : index
    %c0_7 = arith.constant 0 : index
    %3 = vector.load %arg12[%c0_6, %c0_7] : memref<1x32xf32, #tpu.memory_space<vmem>>, vector<1x32xf32>
    %cst = arith.constant dense<0.000000e+00> : vector<16xf32>
    %4 = vector.multi_reduction <add>, %0, %cst [1] : vector<16x32xf32> to vector<16xf32>
    %5 = vector.shape_cast %4 : vector<16xf32> to vector<16x1xf32>
    %cst_8 = arith.constant 3.200000e+01 : f32
    %6 = vector.broadcast %cst_8 : f32 to vector<16x1xf32>
    %7 = arith.divf %5, %6 : vector<16x1xf32>
    %8 = vector.broadcast %7 : vector<16x1xf32> to vector<16x32xf32>
    %9 = arith.subf %0, %8 : vector<16x32xf32>
    %10 = arith.mulf %9, %9 : vector<16x32xf32>
    %cst_9 = arith.constant dense<0.000000e+00> : vector<16xf32>
    %11 = vector.multi_reduction <add>, %10, %cst_9 [1] : vector<16x32xf32> to vector<16xf32>
    %12 = vector.shape_cast %11 : vector<16xf32> to vector<16x1xf32>
    %cst_10 = arith.constant 3.100000e+01 : f32
    %13 = vector.broadcast %cst_10 : f32 to vector<16x1xf32>
    %14 = arith.divf %12, %13 : vector<16x1xf32>
    %15 = math.sqrt %14 : vector<16x1xf32>
    %16 = vector.broadcast %7 : vector<16x1xf32> to vector<16x32xf32>
    %17 = arith.subf %0, %16 : vector<16x32xf32>
    %18 = vector.broadcast %2 : vector<1x32xf32> to vector<16x32xf32>
    %19 = arith.mulf %18, %17 : vector<16x32xf32>
    %cst_11 = arith.constant 9.99999997E-7 : f32
    %20 = vector.broadcast %cst_11 : f32 to vector<16x1xf32>
    %21 = arith.addf %15, %20 : vector<16x1xf32>
    %22 = vector.broadcast %21 : vector<16x1xf32> to vector<16x32xf32>
    %23 = arith.divf %19, %22 : vector<16x32xf32>
    %24 = vector.broadcast %3 : vector<1x32xf32> to vector<16x32xf32>
    %25 = arith.addf %23, %24 : vector<16x32xf32>
    %c0_12 = arith.constant 0 : index
    %c0_13 = arith.constant 0 : index
    %26 = vector.load %arg3[%c0_12, %c0_13] : memref<32x96xf32, #tpu.memory_space<vmem>>, vector<32x96xf32>
    %cst_14 = arith.constant dense<0.000000e+00> : vector<16x96xf32>
    %27 = tpu.matmul %25, %26, %cst_14 {dimension_numbers = #tpu.dot_dimension_numbers<[1], [0], [0], [1], [0, 0, 1, 1], [], []>} : vector<16x32xf32>, vector<32x96xf32>, vector<16x96xf32> -> vector<16x96xf32>
    %c0_15 = arith.constant 0 : index
    %c0_16 = arith.constant 0 : index
    %28 = vector.load %arg4[%c0_15, %c0_16] : memref<1x96xf32, #tpu.memory_space<vmem>>, vector<1x96xf32>
    %29 = vector.broadcast %28 : vector<1x96xf32> to vector<16x96xf32>
    %30 = arith.addf %27, %29 : vector<16x96xf32>
    %cst_17 = arith.constant 8.000000e+00 : f32
    %31 = math.sqrt %cst_17 : f32
    %cst_18 = arith.constant 1.000000e+00 : f32
    %32 = arith.divf %cst_18, %31 : f32
    %33 = vector.extract_strided_slice %30 {offsets = [0, 0], sizes = [16, 32], strides = [1, 1]} : vector<16x96xf32> to vector<16x32xf32>
    %34 = vector.broadcast %32 : f32 to vector<16x32xf32>
    %35 = arith.mulf %33, %34 : vector<16x32xf32>
    %36 = vector.extract_strided_slice %30 {offsets = [0, 32], sizes = [16, 32], strides = [1, 1]} : vector<16x96xf32> to vector<16x32xf32>
    %37 = vector.extract_strided_slice %30 {offsets = [0, 64], sizes = [16, 32], strides = [1, 1]} : vector<16x96xf32> to vector<16x32xf32>
    %c0_19 = arith.constant 0 : index
    %c0_20 = arith.constant 0 : index
    %38 = vector.load %arg6[%c0_19, %c0_20] : memref<1x32xf32, #tpu.memory_space<vmem>>, vector<1x32xf32>
    %39 = vector.broadcast %38 : vector<1x32xf32> to vector<16x32xf32>
    %40 = arith.addf %0, %39 : vector<16x32xf32>
    %41 = vector.extract_strided_slice %35 {offsets = [0, 0], sizes = [16, 8], strides = [1, 1]} : vector<16x32xf32> to vector<16x8xf32>
    %42 = vector.shape_cast %41 : vector<16x8xf32> to vector<2x8x8xf32>
    %43 = vector.extract_strided_slice %36 {offsets = [0, 0], sizes = [16, 8], strides = [1, 1]} : vector<16x32xf32> to vector<16x8xf32>
    %44 = vector.shape_cast %43 : vector<16x8xf32> to vector<2x8x8xf32>
    %45 = vector.extract_strided_slice %37 {offsets = [0, 0], sizes = [16, 8], strides = [1, 1]} : vector<16x32xf32> to vector<16x8xf32>
    %46 = vector.shape_cast %45 : vector<16x8xf32> to vector<2x8x8xf32>
    "tpu.trace_start"() <{level = 10 : i32, message = "bqd,bkd->bqk"}> : () -> ()
    %cst_21 = arith.constant dense<0.000000e+00> : vector<2x8x8xf32>
    %47 = tpu.matmul %42, %44, %cst_21 {dimension_numbers = #tpu.dot_dimension_numbers<[2], [2], [1], [1], [0, 0, 0, 1, 1, 1], [0], [0]>} : vector<2x8x8xf32>, vector<2x8x8xf32>, vector<2x8x8xf32> -> vector<2x8x8xf32>
    "tpu.trace_stop"() : () -> ()
    %48 = vector.broadcast %1 : vector<2x1x8xf32> to vector<2x8x8xf32>
    %49 = arith.addf %47, %48 : vector<2x8x8xf32>
    %cst_22 = arith.constant dense<0xFF800000> : vector<2x8xf32>
    %50 = vector.multi_reduction <maximumf>, %49, %cst_22 [2] : vector<2x8x8xf32> to vector<2x8xf32>
    %51 = vector.shape_cast %50 : vector<2x8xf32> to vector<2x8x1xf32>
    %52 = vector.broadcast %51 : vector<2x8x1xf32> to vector<2x8x8xf32>
    %53 = arith.subf %49, %52 : vector<2x8x8xf32>
    %54 = math.exp %53 : vector<2x8x8xf32>
    %cst_23 = arith.constant dense<0.000000e+00> : vector<2x8xf32>
    %55 = vector.multi_reduction <add>, %54, %cst_23 [2] : vector<2x8x8xf32> to vector<2x8xf32>
    %56 = vector.shape_cast %55 : vector<2x8xf32> to vector<2x8x1xf32>
    %57 = tpu.reciprocal %56 {approx = true} : vector<2x8x1xf32> -> vector<2x8x1xf32>
    %58 = vector.broadcast %57 : vector<2x8x1xf32> to vector<2x8x8xf32>
    %59 = arith.mulf %54, %58 : vector<2x8x8xf32>
    "tpu.trace_start"() <{level = 10 : i32, message = "bqk,bkd->bqd"}> : () -> ()
    %cst_24 = arith.constant dense<0.000000e+00> : vector<2x8x8xf32>
    %60 = tpu.matmul %59, %46, %cst_24 {dimension_numbers = #tpu.dot_dimension_numbers<[2], [1], [1], [2], [0, 0, 0, 1, 1, 2], [0], [0]>} : vector<2x8x8xf32>, vector<2x8x8xf32>, vector<2x8x8xf32> -> vector<2x8x8xf32>
    "tpu.trace_stop"() : () -> ()
    %61 = vector.shape_cast %60 : vector<2x8x8xf32> to vector<16x8xf32>
    %c0_25 = arith.constant 0 : index
    %c0_26 = arith.constant 0 : index
    %62 = vector.load %arg5[%c0_25, %c0_26] : memref<32x32xf32, #tpu.memory_space<vmem>>, vector<8x32xf32>
    %cst_27 = arith.constant dense<0.000000e+00> : vector<16x32xf32>
    %63 = tpu.matmul %61, %62, %cst_27 {dimension_numbers = #tpu.dot_dimension_numbers<[1], [0], [0], [1], [0, 0, 1, 1], [], []>} : vector<16x8xf32>, vector<8x32xf32>, vector<16x32xf32> -> vector<16x32xf32>
    %64 = arith.addf %40, %63 : vector<16x32xf32>
    %65 = vector.extract_strided_slice %35 {offsets = [0, 8], sizes = [16, 8], strides = [1, 1]} : vector<16x32xf32> to vector<16x8xf32>
    %66 = vector.shape_cast %65 : vector<16x8xf32> to vector<2x8x8xf32>
    %67 = vector.extract_strided_slice %36 {offsets = [0, 8], sizes = [16, 8], strides = [1, 1]} : vector<16x32xf32> to vector<16x8xf32>
    %68 = vector.shape_cast %67 : vector<16x8xf32> to vector<2x8x8xf32>
    %69 = vector.extract_strided_slice %37 {offsets = [0, 8], sizes = [16, 8], strides = [1, 1]} : vector<16x32xf32> to vector<16x8xf32>
    %70 = vector.shape_cast %69 : vector<16x8xf32> to vector<2x8x8xf32>
    "tpu.trace_start"() <{level = 10 : i32, message = "bqd,bkd->bqk"}> : () -> ()
    %cst_28 = arith.constant dense<0.000000e+00> : vector<2x8x8xf32>
    %71 = tpu.matmul %66, %68, %cst_28 {dimension_numbers = #tpu.dot_dimension_numbers<[2], [2], [1], [1], [0, 0, 0, 1, 1, 1], [0], [0]>} : vector<2x8x8xf32>, vector<2x8x8xf32>, vector<2x8x8xf32> -> vector<2x8x8xf32>
    "tpu.trace_stop"() : () -> ()
    %72 = vector.broadcast %1 : vector<2x1x8xf32> to vector<2x8x8xf32>
    %73 = arith.addf %71, %72 : vector<2x8x8xf32>
    %cst_29 = arith.constant dense<0xFF800000> : vector<2x8xf32>
    %74 = vector.multi_reduction <maximumf>, %73, %cst_29 [2] : vector<2x8x8xf32> to vector<2x8xf32>
    %75 = vector.shape_cast %74 : vector<2x8xf32> to vector<2x8x1xf32>
    %76 = vector.broadcast %75 : vector<2x8x1xf32> to vector<2x8x8xf32>
    %77 = arith.subf %73, %76 : vector<2x8x8xf32>
    %78 = math.exp %77 : vector<2x8x8xf32>
    %cst_30 = arith.constant dense<0.000000e+00> : vector<2x8xf32>
    %79 = vector.multi_reduction <add>, %78, %cst_30 [2] : vector<2x8x8xf32> to vector<2x8xf32>
    %80 = vector.shape_cast %79 : vector<2x8xf32> to vector<2x8x1xf32>
    %81 = tpu.reciprocal %80 {approx = true} : vector<2x8x1xf32> -> vector<2x8x1xf32>
    %82 = vector.broadcast %81 : vector<2x8x1xf32> to vector<2x8x8xf32>
    %83 = arith.mulf %78, %82 : vector<2x8x8xf32>
    "tpu.trace_start"() <{level = 10 : i32, message = "bqk,bkd->bqd"}> : () -> ()
    %cst_31 = arith.constant dense<0.000000e+00> : vector<2x8x8xf32>
    %84 = tpu.matmul %83, %70, %cst_31 {dimension_numbers = #tpu.dot_dimension_numbers<[2], [1], [1], [2], [0, 0, 0, 1, 1, 2], [0], [0]>} : vector<2x8x8xf32>, vector<2x8x8xf32>, vector<2x8x8xf32> -> vector<2x8x8xf32>
    "tpu.trace_stop"() : () -> ()
    %85 = vector.shape_cast %84 : vector<2x8x8xf32> to vector<16x8xf32>
    %c8 = arith.constant 8 : index
    %c0_32 = arith.constant 0 : index
    %86 = vector.load %arg5[%c8, %c0_32] : memref<32x32xf32, #tpu.memory_space<vmem>>, vector<8x32xf32>
    %cst_33 = arith.constant dense<0.000000e+00> : vector<16x32xf32>
    %87 = tpu.matmul %85, %86, %cst_33 {dimension_numbers = #tpu.dot_dimension_numbers<[1], [0], [0], [1], [0, 0, 1, 1], [], []>} : vector<16x8xf32>, vector<8x32xf32>, vector<16x32xf32> -> vector<16x32xf32>
    %88 = arith.addf %64, %87 : vector<16x32xf32>
    %89 = vector.extract_strided_slice %35 {offsets = [0, 16], sizes = [16, 8], strides = [1, 1]} : vector<16x32xf32> to vector<16x8xf32>
    %90 = vector.shape_cast %89 : vector<16x8xf32> to vector<2x8x8xf32>
    %91 = vector.extract_strided_slice %36 {offsets = [0, 16], sizes = [16, 8], strides = [1, 1]} : vector<16x32xf32> to vector<16x8xf32>
    %92 = vector.shape_cast %91 : vector<16x8xf32> to vector<2x8x8xf32>
    %93 = vector.extract_strided_slice %37 {offsets = [0, 16], sizes = [16, 8], strides = [1, 1]} : vector<16x32xf32> to vector<16x8xf32>
    %94 = vector.shape_cast %93 : vector<16x8xf32> to vector<2x8x8xf32>
    "tpu.trace_start"() <{level = 10 : i32, message = "bqd,bkd->bqk"}> : () -> ()
    %cst_34 = arith.constant dense<0.000000e+00> : vector<2x8x8xf32>
    %95 = tpu.matmul %90, %92, %cst_34 {dimension_numbers = #tpu.dot_dimension_numbers<[2], [2], [1], [1], [0, 0, 0, 1, 1, 1], [0], [0]>} : vector<2x8x8xf32>, vector<2x8x8xf32>, vector<2x8x8xf32> -> vector<2x8x8xf32>
    "tpu.trace_stop"() : () -> ()
    %96 = vector.broadcast %1 : vector<2x1x8xf32> to vector<2x8x8xf32>
    %97 = arith.addf %95, %96 : vector<2x8x8xf32>
    %cst_35 = arith.constant dense<0xFF800000> : vector<2x8xf32>
    %98 = vector.multi_reduction <maximumf>, %97, %cst_35 [2] : vector<2x8x8xf32> to vector<2x8xf32>
    %99 = vector.shape_cast %98 : vector<2x8xf32> to vector<2x8x1xf32>
    %100 = vector.broadcast %99 : vector<2x8x1xf32> to vector<2x8x8xf32>
    %101 = arith.subf %97, %100 : vector<2x8x8xf32>
    %102 = math.exp %101 : vector<2x8x8xf32>
    %cst_36 = arith.constant dense<0.000000e+00> : vector<2x8xf32>
    %103 = vector.multi_reduction <add>, %102, %cst_36 [2] : vector<2x8x8xf32> to vector<2x8xf32>
    %104 = vector.shape_cast %103 : vector<2x8xf32> to vector<2x8x1xf32>
    %105 = tpu.reciprocal %104 {approx = true} : vector<2x8x1xf32> -> vector<2x8x1xf32>
    %106 = vector.broadcast %105 : vector<2x8x1xf32> to vector<2x8x8xf32>
    %107 = arith.mulf %102, %106 : vector<2x8x8xf32>
    "tpu.trace_start"() <{level = 10 : i32, message = "bqk,bkd->bqd"}> : () -> ()
    %cst_37 = arith.constant dense<0.000000e+00> : vector<2x8x8xf32>
    %108 = tpu.matmul %107, %94, %cst_37 {dimension_numbers = #tpu.dot_dimension_numbers<[2], [1], [1], [2], [0, 0, 0, 1, 1, 2], [0], [0]>} : vector<2x8x8xf32>, vector<2x8x8xf32>, vector<2x8x8xf32> -> vector<2x8x8xf32>
    "tpu.trace_stop"() : () -> ()
    %109 = vector.shape_cast %108 : vector<2x8x8xf32> to vector<16x8xf32>
    %c16 = arith.constant 16 : index
    %c0_38 = arith.constant 0 : index
    %110 = vector.load %arg5[%c16, %c0_38] : memref<32x32xf32, #tpu.memory_space<vmem>>, vector<8x32xf32>
    %cst_39 = arith.constant dense<0.000000e+00> : vector<16x32xf32>
    %111 = tpu.matmul %109, %110, %cst_39 {dimension_numbers = #tpu.dot_dimension_numbers<[1], [0], [0], [1], [0, 0, 1, 1], [], []>} : vector<16x8xf32>, vector<8x32xf32>, vector<16x32xf32> -> vector<16x32xf32>
    %112 = arith.addf %88, %111 : vector<16x32xf32>
    %113 = vector.extract_strided_slice %35 {offsets = [0, 24], sizes = [16, 8], strides = [1, 1]} : vector<16x32xf32> to vector<16x8xf32>
    %114 = vector.shape_cast %113 : vector<16x8xf32> to vector<2x8x8xf32>
    %115 = vector.extract_strided_slice %36 {offsets = [0, 24], sizes = [16, 8], strides = [1, 1]} : vector<16x32xf32> to vector<16x8xf32>
    %116 = vector.shape_cast %115 : vector<16x8xf32> to vector<2x8x8xf32>
    %117 = vector.extract_strided_slice %37 {offsets = [0, 24], sizes = [16, 8], strides = [1, 1]} : vector<16x32xf32> to vector<16x8xf32>
    %118 = vector.shape_cast %117 : vector<16x8xf32> to vector<2x8x8xf32>
    "tpu.trace_start"() <{level = 10 : i32, message = "bqd,bkd->bqk"}> : () -> ()
    %cst_40 = arith.constant dense<0.000000e+00> : vector<2x8x8xf32>
    %119 = tpu.matmul %114, %116, %cst_40 {dimension_numbers = #tpu.dot_dimension_numbers<[2], [2], [1], [1], [0, 0, 0, 1, 1, 1], [0], [0]>} : vector<2x8x8xf32>, vector<2x8x8xf32>, vector<2x8x8xf32> -> vector<2x8x8xf32>
    "tpu.trace_stop"() : () -> ()
    %120 = vector.broadcast %1 : vector<2x1x8xf32> to vector<2x8x8xf32>
    %121 = arith.addf %119, %120 : vector<2x8x8xf32>
    %cst_41 = arith.constant dense<0xFF800000> : vector<2x8xf32>
    %122 = vector.multi_reduction <maximumf>, %121, %cst_41 [2] : vector<2x8x8xf32> to vector<2x8xf32>
    %123 = vector.shape_cast %122 : vector<2x8xf32> to vector<2x8x1xf32>
    %124 = vector.broadcast %123 : vector<2x8x1xf32> to vector<2x8x8xf32>
    %125 = arith.subf %121, %124 : vector<2x8x8xf32>
    %126 = math.exp %125 : vector<2x8x8xf32>
    %cst_42 = arith.constant dense<0.000000e+00> : vector<2x8xf32>
    %127 = vector.multi_reduction <add>, %126, %cst_42 [2] : vector<2x8x8xf32> to vector<2x8xf32>
    %128 = vector.shape_cast %127 : vector<2x8xf32> to vector<2x8x1xf32>
    %129 = tpu.reciprocal %128 {approx = true} : vector<2x8x1xf32> -> vector<2x8x1xf32>
    %130 = vector.broadcast %129 : vector<2x8x1xf32> to vector<2x8x8xf32>
    %131 = arith.mulf %126, %130 : vector<2x8x8xf32>
    "tpu.trace_start"() <{level = 10 : i32, message = "bqk,bkd->bqd"}> : () -> ()
    %cst_43 = arith.constant dense<0.000000e+00> : vector<2x8x8xf32>
    %132 = tpu.matmul %131, %118, %cst_43 {dimension_numbers = #tpu.dot_dimension_numbers<[2], [1], [1], [2], [0, 0, 0, 1, 1, 2], [0], [0]>} : vector<2x8x8xf32>, vector<2x8x8xf32>, vector<2x8x8xf32> -> vector<2x8x8xf32>
    "tpu.trace_stop"() : () -> ()
    %133 = vector.shape_cast %132 : vector<2x8x8xf32> to vector<16x8xf32>
    %c24 = arith.constant 24 : index
    %c0_44 = arith.constant 0 : index
    %134 = vector.load %arg5[%c24, %c0_44] : memref<32x32xf32, #tpu.memory_space<vmem>>, vector<8x32xf32>
    %cst_45 = arith.constant dense<0.000000e+00> : vector<16x32xf32>
    %135 = tpu.matmul %133, %134, %cst_45 {dimension_numbers = #tpu.dot_dimension_numbers<[1], [0], [0], [1], [0, 0, 1, 1], [], []>} : vector<16x8xf32>, vector<8x32xf32>, vector<16x32xf32> -> vector<16x32xf32>
    %136 = arith.addf %112, %135 : vector<16x32xf32>
    %c0_46 = arith.constant 0 : index
    %c0_47 = arith.constant 0 : index
    %137 = vector.load %arg13[%c0_46, %c0_47] : memref<1x32xf32, #tpu.memory_space<vmem>>, vector<1x32xf32>
    %c0_48 = arith.constant 0 : index
    %c0_49 = arith.constant 0 : index
    %138 = vector.load %arg14[%c0_48, %c0_49] : memref<1x32xf32, #tpu.memory_space<vmem>>, vector<1x32xf32>
    %cst_50 = arith.constant dense<0.000000e+00> : vector<16xf32>
    %139 = vector.multi_reduction <add>, %136, %cst_50 [1] : vector<16x32xf32> to vector<16xf32>
    %140 = vector.shape_cast %139 : vector<16xf32> to vector<16x1xf32>
    %cst_51 = arith.constant 3.200000e+01 : f32
    %141 = vector.broadcast %cst_51 : f32 to vector<16x1xf32>
    %142 = arith.divf %140, %141 : vector<16x1xf32>
    %143 = vector.broadcast %142 : vector<16x1xf32> to vector<16x32xf32>
    %144 = arith.subf %136, %143 : vector<16x32xf32>
    %145 = arith.mulf %144, %144 : vector<16x32xf32>
    %cst_52 = arith.constant dense<0.000000e+00> : vector<16xf32>
    %146 = vector.multi_reduction <add>, %145, %cst_52 [1] : vector<16x32xf32> to vector<16xf32>
    %147 = vector.shape_cast %146 : vector<16xf32> to vector<16x1xf32>
    %cst_53 = arith.constant 3.100000e+01 : f32
    %148 = vector.broadcast %cst_53 : f32 to vector<16x1xf32>
    %149 = arith.divf %147, %148 : vector<16x1xf32>
    %150 = math.sqrt %149 : vector<16x1xf32>
    %151 = vector.broadcast %142 : vector<16x1xf32> to vector<16x32xf32>
    %152 = arith.subf %136, %151 : vector<16x32xf32>
    %153 = vector.broadcast %137 : vector<1x32xf32> to vector<16x32xf32>
    %154 = arith.mulf %153, %152 : vector<16x32xf32>
    %cst_54 = arith.constant 9.99999997E-7 : f32
    %155 = vector.broadcast %cst_54 : f32 to vector<16x1xf32>
    %156 = arith.addf %150, %155 : vector<16x1xf32>
    %157 = vector.broadcast %156 : vector<16x1xf32> to vector<16x32xf32>
    %158 = arith.divf %154, %157 : vector<16x32xf32>
    %159 = vector.broadcast %138 : vector<1x32xf32> to vector<16x32xf32>
    %160 = arith.addf %158, %159 : vector<16x32xf32>
    %c0_55 = arith.constant 0 : index
    %c0_56 = arith.constant 0 : index
    %161 = vector.load %arg7[%c0_55, %c0_56] : memref<32x64xf32, #tpu.memory_space<vmem>>, vector<32x64xf32>
    %cst_57 = arith.constant dense<0.000000e+00> : vector<16x64xf32>
    %162 = tpu.matmul %160, %161, %cst_57 {dimension_numbers = #tpu.dot_dimension_numbers<[1], [0], [0], [1], [0, 0, 1, 1], [], []>} : vector<16x32xf32>, vector<32x64xf32>, vector<16x64xf32> -> vector<16x64xf32>
    %c0_58 = arith.constant 0 : index
    %c0_59 = arith.constant 0 : index
    %163 = vector.load %arg8[%c0_58, %c0_59] : memref<1x64xf32, #tpu.memory_space<vmem>>, vector<1x64xf32>
    %164 = vector.broadcast %163 : vector<1x64xf32> to vector<16x64xf32>
    %165 = arith.addf %162, %164 : vector<16x64xf32>
    %cst_60 = arith.constant 0.000000e+00 : f32
    %166 = vector.broadcast %cst_60 : f32 to vector<16x64xf32>
    %167 = arith.maximumf %165, %166 : vector<16x64xf32>
    %c0_61 = arith.constant 0 : index
    %c0_62 = arith.constant 0 : index
    %168 = vector.load %arg9[%c0_61, %c0_62] : memref<64x32xf32, #tpu.memory_space<vmem>>, vector<64x32xf32>
    %cst_63 = arith.constant dense<0.000000e+00> : vector<16x32xf32>
    %169 = tpu.matmul %167, %168, %cst_63 {dimension_numbers = #tpu.dot_dimension_numbers<[1], [0], [0], [1], [0, 0, 1, 1], [], []>} : vector<16x64xf32>, vector<64x32xf32>, vector<16x32xf32> -> vector<16x32xf32>
    %c0_64 = arith.constant 0 : index
    %c0_65 = arith.constant 0 : index
    %170 = vector.load %arg10[%c0_64, %c0_65] : memref<1x32xf32, #tpu.memory_space<vmem>>, vector<1x32xf32>
    %171 = vector.broadcast %170 : vector<1x32xf32> to vector<16x32xf32>
    %172 = arith.addf %169, %171 : vector<16x32xf32>
    %173 = arith.addf %136, %172 : vector<16x32xf32>
    %c0_66 = arith.constant 0 : index
    %c0_67 = arith.constant 0 : index
    %174 = vector.load %arg15[%c0_66, %c0_67] : memref<16x32xf32, #tpu.memory_space<vmem>>, vector<16x32xf32>
    tpu.vector_store %arg15[%c0_66, %c0_67], %173 {strides = array<i32>} : memref<16x32xf32, #tpu.memory_space<vmem>>, vector<16x32xf32>,
    return
  }
  func.func @transform_0(%arg0: i32) -> (i32, i32) {
    %c0_i32 = arith.constant 0 : i32
    %c0_i32_0 = arith.constant 0 : i32
    %c0_i32_1 = arith.constant 0 : i32
    return %c0_i32, %c0_i32_0 : i32, i32
  }
  func.func @transform_1(%arg0: i32) -> (i32, i32, i32) {
    %c0_i32 = arith.constant 0 : i32
    %c0_i32_0 = arith.constant 0 : i32
    %c0_i32_1 = arith.constant 0 : i32
    %c0_i32_2 = arith.constant 0 : i32
    return %c0_i32, %c0_i32_0, %c0_i32_1 : i32, i32, i32
  }
  func.func @transform_2(%arg0: i32) -> (i32, i32) {
    %c0_i32 = arith.constant 0 : i32
    %c0_i32_0 = arith.constant 0 : i32
    %c0_i32_1 = arith.constant 0 : i32
    return %c0_i32, %c0_i32_0 : i32, i32
  }
  func.func @transform_3(%arg0: i32) -> (i32, i32) {
    %c0_i32 = arith.constant 0 : i32
    %c0_i32_0 = arith.constant 0 : i32
    %c0_i32_1 = arith.constant 0 : i32
    return %c0_i32, %c0_i32_0 : i32, i32
  }
  func.func @transform_4(%arg0: i32) -> (i32, i32) {
    %c0_i32 = arith.constant 0 : i32
    %c0_i32_0 = arith.constant 0 : i32
    %c0_i32_1 = arith.constant 0 : i32
    return %c0_i32, %c0_i32_0 : i32, i32
  }
  func.func @transform_5(%arg0: i32) -> (i32, i32) {
    %c0_i32 = arith.constant 0 : i32
    %c0_i32_0 = arith.constant 0 : i32
    %c0_i32_1 = arith.constant 0 : i32
    return %c0_i32, %c0_i32_0 : i32, i32
  }
  func.func @transform_6(%arg0: i32) -> (i32, i32) {
    %c0_i32 = arith.constant 0 : i32
    %c0_i32_0 = arith.constant 0 : i32
    %c0_i32_1 = arith.constant 0 : i32
    return %c0_i32, %c0_i32_0 : i32, i32
  }
  func.func @transform_7(%arg0: i32) -> (i32, i32) {
    %c0_i32 = arith.constant 0 : i32
    %c0_i32_0 = arith.constant 0 : i32
    %c0_i32_1 = arith.constant 0 : i32
    return %c0_i32, %c0_i32_0 : i32, i32
  }
  func.func @transform_8(%arg0: i32) -> (i32, i32) {
    %c0_i32 = arith.constant 0 : i32
    %c0_i32_0 = arith.constant 0 : i32
    %c0_i32_1 = arith.constant 0 : i32
    return %c0_i32, %c0_i32_0 : i32, i32
  }
  func.func @transform_9(%arg0: i32) -> (i32, i32) {
    %c0_i32 = arith.constant 0 : i32
    %c0_i32_0 = arith.constant 0 : i32
    %c0_i32_1 = arith.constant 0 : i32
    return %c0_i32, %c0_i32_0 : i32, i32
  }
  func.func @transform_10(%arg0: i32) -> (i32, i32) {
    %c0_i32 = arith.constant 0 : i32
    %c0_i32_0 = arith.constant 0 : i32
    %c0_i32_1 = arith.constant 0 : i32
    return %c0_i32, %c0_i32_0 : i32, i32
  }
  func.func @transform_11(%arg0: i32) -> (i32, i32) {
    %c0_i32 = arith.constant 0 : i32
    %c0_i32_0 = arith.constant 0 : i32
    %c0_i32_1 = arith.constant 0 : i32
    return %c0_i32, %c0_i32_0 : i32, i32
  }
  func.func @transform_12(%arg0: i32) -> (i32, i32) {
    %c0_i32 = arith.constant 0 : i32
    %c0_i32_0 = arith.constant 0 : i32
    %c0_i32_1 = arith.constant 0 : i32
    return %c0_i32, %c0_i32_0 : i32, i32
  }
  func.func @transform_13(%arg0: i32) -> (i32, i32) {
    %c0_i32 = arith.constant 0 : i32
    %c0_i32_0 = arith.constant 0 : i32
    %c0_i32_1 = arith.constant 0 : i32
    return %c0_i32, %c0_i32_0 : i32, i32
  }
  func.func @transform_14(%arg0: i32) -> (i32, i32) {
    %c0_i32 = arith.constant 0 : i32
    %c0_i32_0 = arith.constant 0 : i32
    %c0_i32_1 = arith.constant 0 : i32
    return %c0_i32, %c0_i32_0 : i32, i32
  }
}

</mosaic_0001>

<bundles_post_ra>
// kernel: tpu_custom_call.1
= control target key start
LH: loop header
LB: loop body
LE: loop exit
PB: predicated region body
PF: predicated region fallthrough
CT: control target
= control target key end

     0   :  { %19 = vsyncpa [#allocation3], 0  ;;  %s2973_s0 = inlined_call_operand.hbm [shape: f32[16,32], index: 0, kind: input, shape index: {}]   ;;  %s2974_s1 = inlined_call_operand.vmem [shape: f32[2,1,8], index: 1, kind: input, shape index: {}]   ;;  %s2975_s2 = inlined_call_operand.vmem [shape: f32[32,96], index: 2, kind: input, shape index: {}]   ;;  %s2976_s3 = inlined_call_operand.vmem [shape: f32[1,96], index: 3, kind: input, shape index: {}]   ;;  %s2977_s4 = inlined_call_operand.vmem [shape: f32[32,32], index: 4, kind: input, shape index: {}]   ;;  %s2978_s5 = inlined_call_operand.vmem [shape: f32[1,32], index: 5, kind: input, shape index: {}]   ;;  %s2979_s6 = inlined_call_operand.vmem [shape: f32[32,64], index: 6, kind: input, shape index: {}]   ;;  %s2980_s7 = inlined_call_operand.vmem [shape: f32[1,64], index: 7, kind: input, shape index: {}]   ;;  %s2981_s8 = inlined_call_operand.vmem [shape: f32[64,32], index: 8, kind: input, shape index: {}]   ;;  %s2982_s9 = inlined_call_operand.vmem [shape: f32[1,32], index: 9, kind: input, shape index: {}]   ;;  %s2983_s10 = inlined_call_operand.vmem [shape: f32[1,32], index: 10, kind: input, shape index: {}]   ;;  %s2984_s11 = inlined_call_operand.vmem [shape: f32[1,32], index: 11, kind: input, shape index: {}]   ;;  %s2985_s12 = inlined_call_operand.vmem [shape: f32[1,32], index: 12, kind: input, shape index: {}]   ;;  %s2986_s13 = inlined_call_operand.vmem [shape: f32[1,32], index: 13, kind: input, shape index: {}]   ;;  %s2987_s14 = inlined_call_operand.hbm [shape: f32[16,32], index: 14, kind: output, shape index: {}]  }
   0x1   :  { %20 = vsyncpa [#allocation4], 0  ;;  %s2577_s29 = smov [#allocation2]   ;;  %s2529_s17 = scalar_lea.hbm %s2973_s0, 256 }
   0x2   :  { %s26_s30 = sshll.u32 %s2577_s29, 4  ;;  %p2530_p0 = scmp.ne.s32.totalorder %s2973_s0, %s2529_s17  ;;  %s27_s30 = int_to_ptr.vmem [resolvable:$true] %s26_s30 }
   0x3   :  { %p2533_p1 = scmp.lt.u32.totalorder %s2529_s17, %s2973_s0 }
   0x5   :  { %p2535_p2 = pnand %p2533_p1, %p2530_p0 }
   0x7   :  { %2538 = shalt.err (!%p2535_p2)
}
   0x8   :  { %s2539_s22 = scalar_lea.vmem %s27_s30, 256  ;;  %p2544_p4 = scmp.lt.s32.totalorder %s27_s30, %s27_s30 }
   0x9   :  { %p2540_p3 = scmp.ne.s32.totalorder %s27_s30, %s2539_s22  ;;  %p2545_p5 = scmp.lt.s32.totalorder %s2539_s22, %s2539_s22 }
   0xb   :  { %p2546_p6 = por %p2545_p5, %p2544_p4 }
   0xd   :  { %p2547_p7 = pnand %p2546_p6, %p2540_p3 }
   0xf   :  { %2550 = shalt.err (!%p2547_p7)
}
  0x10   :  { %s2578_s23 = smov 128   ;;  %s2579_s24 = smov 8  }
  0x11   :  { %32 = dma.hbm_to_vmem [thread:$0]  %s2973_s0, 256, %s27_s30, [#allocation3], %s2578_s23, %s2578_s23, %s2579_s24  }
  0x12   :  { %2573 = dma.done.wait [#allocation3], 256  }
  0x13   :  { %2574 = vsyncadd [#allocation3], 4294967040  ;;  %vm68_vm0 = vcmask 261120   ;;  %v2684_v0 = vld [vmem:[#allocation2] sm:$0xff]  ;;  %v2686_v1 = vld [vmem:[#allocation2 + $0x8] sm:$0xff]  ;;  %v2580_v46 = vmov 0.0  }
  0x14   :  { %v69_v2 = vsel %vm68_vm0, %v2684_v0, 0.0  ;;  %v72_v3 = vsel %vm68_vm0, %v2686_v1, 0.0  ;;  %v127_v14 = vld [vmem:[%s2975_s2] sm:$0xff]  ;;  %v128_v15 = vld [vmem:[%s2975_s2 + $0x8] sm:$0xff]  ;;  %v129_v16 = vld [vmem:[%s2975_s2 + $0x10] sm:$0xff]  ;;  %2304 = vmatprep.subr.mxu0 %v2580_v46  ;;  %vm2581_vm5 = vmmov 0  }
  0x15   :  { %70 = vadd.xlane.f32.xlu0 %v69_v2  ;;  %v2424_v17 = vpack.c.bf16 %v128_v15, %v127_v14  ;;  %v130_v18 = vld [vmem:[%s2975_s2 + $0x18] sm:$0xff]  ;;  %v2169_v36 = vld [vmem:[%s2983_s10] ss:$0 sm:$0xff]  ;;  %2306 = vmatprep.mubr.msk.f32.mxu0 %vm2581_vm5, %v2580_v46  ;;  %s2582_s21 = smov 96   ;;  %vm245_vm6 = vcmask 64512   ;;  %s2584_s0 = smov 88  }
  0x16   :  { %v2428_v19 = vpack.c.bf16 %v130_v18, %v129_v16  ;;  %v2170_v39 = vld [vmem:[%s2984_s11] ss:$0 sm:$0xff]  ;;  %v2758_v60 = vld [vmem:[%s2974_s1 + $0x1] ss:$0 sm:$0xff]  ;;  %s2585_s27 = smov 120   ;;  %s2586_s28 = smov 80  }
  0x17   :  { %2425 = vmatprep.subr.bf16.mxu1 %v2424_v17  ;;  %v2171_v47 = vld [vmem:[%s2976_s3] ss:$0 sm:$0xff]  ;;  %s2587_s15 = smov 56   ;;  %s2588_s16 = smov 112   ;;  %vm2066_vm11 = vcmask 523264  }
  0x18   :  { %2427 = vmatpush3.bf16.msra.mxu1 %v2424_v17  ;;  %v2752_v56 = vld [vmem:[%s2974_s1] ss:$0 sm:$0xff]  ;;  %s2583_s1 = smov 64   ;;  %s2589_s17 = smov 48  }
  0x19   :  { %73 = vadd.xlane.f32.xlu0 %v72_v3  ;;  %2429 = vmatprep.subr.bf16.mxu1 %v2428_v19  ;;  %v573_v15 = vld [vmem:[%s2977_s4] sm:$0xff]  ;;  %s2590_s2 = smov 72   ;;  %s2591_s18 = smov 104  }
  0x1c   :  { %2431 = vmatpush3.bf16.msra.mxu1 %v2428_v19 }
  0x1d   :  { %2294 = vmatprep.subr.mxu1 %v2580_v46 }
  0xa2   :  { %v71_v4 = vpop.xlane.xlu0 %70 }
  0xa3   :  { %v76_v5 = vmul.f32 0.03125, %v71_v4 }
  0xa5   :  { %v78_v6 = vsub.f32 %v2684_v0, %v76_v5 }
  0xa6   :  { %v74_v7 = vpop.xlane.xlu0 %73 }
  0xa7   :  { %v77_v8 = vmul.f32 0.03125, %v74_v7  ;;  %v80_v9 = vmul.f32 %v78_v6, %v78_v6  ;;  %v111_v37 = vmul.f32 %v2169_v36, %v78_v6 }
  0xa9   :  { %v79_v10 = vsub.f32 %v2686_v1, %v77_v8  ;;  %v82_v11 = vsel %vm68_vm0, %v80_v9, 0.0 }
  0xaa   :  { %83 = vadd.xlane.f32.xlu1 %v82_v11 }
  0xab   :  { %v81_v12 = vmul.f32 %v79_v10, %v79_v10  ;;  %v112_v41 = vmul.f32 %v2169_v36, %v79_v10 }
  0xad   :  { %v85_v13 = vsel %vm68_vm0, %v81_v12, 0.0 }
  0xae   :  { %86 = vadd.xlane.f32.xlu1 %v85_v13 }
 0x137   :  { %v84_v20 = vpop.xlane.xlu1 %83 }
 0x138   :  { %v89_v21 = vmul.f32 0.032258064, %v84_v20 }
 0x13a   :  { %2481 = vrsqrt.f32 %v89_v21  ;;  %vm93_vm1 = vcmp.eq.f32.partialorder %v89_v21, inf  ;;  %v96_v26 = vand.u32 2147483648, %v89_v21  ;;  %vm95_vm2 = vcmp.eq.f32.partialorder %v89_v21, 0.0 }
 0x13b   :  { %v87_v22 = vpop.xlane.xlu1 %86 }
 0x13c   :  { %v90_v23 = vmul.f32 0.032258064, %v87_v22 }
 0x13e   :  { %2483 = vrsqrt.f32 %v90_v23  ;;  %vm100_vm3 = vcmp.eq.f32.partialorder %v90_v23, inf  ;;  %v103_v32 = vand.u32 2147483648, %v90_v23  ;;  %vm102_vm4 = vcmp.eq.f32.partialorder %v90_v23, 0.0 }
 0x144   :  { %v2482_v24 = vpop.eup %2481 }
 0x145   :  { %v92_v25 = vmul.f32 %v2482_v24, %v89_v21 }
 0x147   :  { %v94_v27 = vsel %vm93_vm1, %v89_v21, %v92_v25 }
 0x148   :  { %v2484_v28 = vpop.eup %2483  ;;  %v97_v29 = vsel %vm95_vm2, %v96_v26, %v94_v27 }
 0x149   :  { %v99_v30 = vmul.f32 %v2484_v28, %v90_v23  ;;  %v113_v31 = vadd.f32 1e-06, %v97_v29 }
 0x14b   :  { %v101_v33 = vsel %vm100_vm3, %v90_v23, %v99_v30  ;;  %2485 = vrcp.f32 %v113_v31 }
 0x14c   :  { %v104_v34 = vsel %vm102_vm4, %v103_v32, %v101_v33 }
 0x14d   :  { %v114_v35 = vadd.f32 1e-06, %v104_v34 }
 0x14f   :  { %2487 = vrcp.f32 %v114_v35 }
 0x155   :  { %v2486_v38 = vpop.eup %2485 }
 0x156   :  { %v116_v40 = vmul.f32 %v2486_v38, %v111_v37 }
 0x158   :  { %v125_v42 = vadd.f32 %v2170_v39, %v116_v40 }
 0x159   :  { %v2488_v43 = vpop.eup %2487 }
 0x15a   :  { %v118_v44 = vmul.f32 %v2488_v43, %v112_v41  ;;  %2291 = vmatprep.mubr.msk.f32.mxu1 %vm68_vm0, %v125_v42 }
 0x15c   :  { %v126_v45 = vadd.f32 %v2170_v39, %v118_v44 }
 0x15e   :  { %2292 = vmatmul.mubr.msk.f32.vlgmr.msra.gmra.mrb[0].mxu1 %vm68_vm0, %v126_v45 }
 0x15f   :  { %2296 = vmatprep.mubr.msk.f32.mxu1 %vm2581_vm5, %v2580_v46 }
 0x231   :  { %v2293_v48 = vpop.f32.mrb[0].mxu1 }
 0x232   :  { %v2725_v49 = vadd.f32 %v2293_v48, %v2171_v47  ;;  %v210_v50 = vpop.f32.mrb[1].mxu1 }
 0x233   :  { %v2727_v51 = vadd.f32 %v2171_v47, %v210_v50 }
 0x234   :  { %322 = vrot.lane.b32.xlu1 %v2725_v49, %s2582_s21  ;;  %v2742_v55 = vmul.f32 0.35355338, %v2725_v49 }
 0x235   :  { %243 = vrot.lane.b32.xlu0 %v2727_v51, %s2582_s21  ;;  %v2733_v53 = vmul.f32 0.35355338, %v2727_v51  ;;  %s2592_s21 = smov 40  }
 0x2a6   :  { %v323_v54 = vpop.permute.xlu1 %322 }
 0x2a7   :  { %v244_v52 = vpop.permute.xlu0 %243 }
 0x2a8   :  { %2295 = vmatpush3.xpose.msk.msra.mxu1 %vm245_vm6, %v244_v52 }
 0x2a9   :  { %2299 = vmatprep.subr.mxu1 %v2580_v46 }
 0x2ab   :  { %2297 = vmatmul.mubr.msk.f32.vlgmr.msra.gmra.mrb[2].mxu1 %vm245_vm6, %v2733_v53 }
 0x2ac   :  { %2300 = vmatpush3.xpose.msk.msra.mxu1 %vm245_vm6, %v323_v54  ;;  %2301 = vmatprep.mubr.msk.f32.mxu1 %vm2581_vm5, %v2580_v46 }
 0x2ad   :  { %2309 = vmatprep.subr.mxu1 %v2580_v46 }
 0x2af   :  { %2302 = vmatmul.mubr.msk.f32.vlgmr.msra.gmra.mrb[4].mxu1 %vm245_vm6, %v2742_v55 }
 0x2b0   :  { %2311 = vmatprep.mubr.msk.f32.mxu1 %vm2581_vm5, %v2580_v46 }
 0x37e   :  { %v317_v57 = vpop.f32.mrb[2].mxu1 }
 0x37f   :  { %v318_v58 = vadd.f32 %v2752_v56, %v317_v57  ;;  %v2298_v59 = vpop.f32.mrb[3].mxu1 }
 0x381   :  { %v399_v61 = vsel %vm245_vm6, %v318_v58, -inf }
 0x382   :  { %400 = vmax.xlane.f32.xlu1 %v399_v61  ;;  %v395_v62 = vpop.f32.mrb[4].mxu1 }
 0x383   :  { %v396_v63 = vadd.f32 %v2758_v60, %v395_v62  ;;  %v2303_v2 = vpop.f32.mrb[5].mxu1 }
 0x385   :  { %v402_v3 = vsel %vm245_vm6, %v396_v63, -inf }
 0x386   :  { %403 = vmax.xlane.f32.xlu0 %v402_v3 }
 0x40f   :  { %v401_v4 = vpop.xlane.xlu1 %400 }
 0x410   :  { %v405_v5 = vsub.f32 %v318_v58, %v401_v4 }
 0x412   :  { %v407_v6 = vmul.f32 1.442695, %v405_v5 }
 0x413   :  { %v404_v7 = vpop.xlane.xlu0 %403 }
 0x414   :  { %2489 = vpow2.f32 %v407_v6  ;;  %v406_v8 = vsub.f32 %v396_v63, %v404_v7 }
 0x416   :  { %v409_v9 = vmul.f32 1.442695, %v406_v8 }
 0x418   :  { %2491 = vpow2.f32 %v409_v9 }
 0x41e   :  { %v2490_v10 = vpop.eup %2489 }
 0x41f   :  { %v411_v11 = vsel %vm245_vm6, %v2490_v10, 0.0 }
 0x420   :  { %412 = vadd.xlane.f32.xlu0 %v411_v11 }
 0x422   :  { %v2492_v12 = vpop.eup %2491 }
 0x423   :  { %v414_v13 = vsel %vm245_vm6, %v2492_v12, 0.0 }
 0x424   :  { %415 = vadd.xlane.f32.xlu1 %v414_v13 }
 0x435   :  { %497 = vrot.lane.b32.xlu1 %v2725_v49, %s2583_s1 }
 0x436   :  { %421 = vrot.lane.b32.xlu0 %v2727_v51, %s2583_s1 }
 0x439   :  { %659 = vrot.lane.b32.xlu1 %v2727_v51, %s2584_s0 }
 0x43a   :  { %737 = vrot.lane.b32.xlu0 %v2725_v49, %s2584_s0 }
 0x43d   :  { %657 = vrot.lane.b32.xlu1 %v2733_v53, %s2585_s27 }
 0x441   :  { %735 = vrot.lane.b32.xlu1 %v2742_v55, %s2585_s27 }
 0x445   :  { %1073 = vrot.lane.b32.xlu1 %v2727_v51, %s2586_s28 }
 0x4ad   :  { %v413_v14 = vpop.xlane.xlu0 %412 }
 0x4ae   :  { %2493 = vrcp.f32 %v413_v14 }
 0x4b1   :  { %v416_v16 = vpop.xlane.xlu1 %415  ;;  %v422_v17 = vpop.permute.xlu0 %421 }
 0x4b2   :  { %2495 = vrcp.f32 %v416_v16  ;;  %2305 = vmatpush3.msra.mxu0 %v422_v17  ;;  %v987_v16 = vld [vmem:[%s2977_s4 + $0x8] sm:$0xff] }
 0x4b3   :  { %2314 = vmatprep.subr.mxu0 %v573_v15 }
 0x4b5   :  { %v498_v18 = vpop.permute.xlu1 %497  ;;  %v738_v28 = vpop.permute.xlu0 %737 }
 0x4b6   :  { %2310 = vmatpush3.msra.mxu1 %v498_v18 }
 0x4b7   :  { %2319 = vmatprep.subr.mxu1 %v2580_v46 }
 0x4b8   :  { %v2494_v19 = vpop.eup %2493 }
 0x4b9   :  { %v419_v20 = vmul.f32 %v2494_v19, %v2490_v10  ;;  %v660_v22 = vpop.permute.xlu1 %659 }
 0x4bb   :  { %2307 = vmatmul.mubr.msk.f32.vlgmr.msra.gmra.mrb[0].mxu0 %vm245_vm6, %v419_v20 }
 0x4bc   :  { %v2496_v21 = vpop.eup %2495  ;;  %2315 = vmatpush3.msra.mxu0 %v573_v15 }
 0x4bd   :  { %v420_v23 = vmul.f32 %v2496_v21, %v2492_v12  ;;  %2324 = vmatprep.subr.mxu0 %v2580_v46  ;;  %v658_v24 = vpop.permute.xlu1 %657 }
 0x4bf   :  { %2312 = vmatmul.mubr.msk.f32.vlgmr.msra.gmra.mrb[6].mxu1 %vm245_vm6, %v420_v23 }
 0x4c0   :  { %2320 = vmatpush3.xpose.msk.msra.mxu1 %vm245_vm6, %v660_v22  ;;  %2321 = vmatprep.mubr.msk.f32.mxu1 %vm2581_vm5, %v2580_v46 }
 0x4c1   :  { %2329 = vmatprep.subr.mxu1 %v2580_v46  ;;  %v736_v30 = vpop.permute.xlu1 %735 }
 0x4c3   :  { %2322 = vmatmul.mubr.msk.f32.vlgmr.msra.gmra.mrb[8].mxu1 %vm245_vm6, %v658_v24 }
 0x4c4   :  { %2331 = vmatprep.mubr.msk.f32.mxu1 %vm2581_vm5, %v2580_v46 }
 0x4c5   :  { %v1074_v45 = vpop.permute.xlu1 %1073 }
 0x58e   :  { %v493_v25 = vpop.f32.mrb[0].mxu0 }
 0x58f   :  { %v2308_v26 = vpop.f32.mrb[1].mxu0  ;;  %2316 = vmatprep.mubr.msk.f32.mxu0 %vm245_vm6, %v493_v25 }
 0x592   :  { %v569_v27 = vpop.f32.mrb[6].mxu1 }
 0x593   :  { %v2313_v29 = vpop.f32.mrb[7].mxu1  ;;  %2317 = vmatmul.mubr.msk.f32.vlgmr.msra.gmra.mrb[2].mxu0 %vm245_vm6, %v569_v27 }
 0x594   :  { %2325 = vmatpush3.xpose.msk.msra.mxu0 %vm245_vm6, %v738_v28  ;;  %2326 = vmatprep.mubr.msk.f32.mxu0 %vm2581_vm5, %v2580_v46 }
 0x595   :  { %2334 = vmatprep.subr.mxu0 %v2580_v46 }
 0x596   :  { %v731_v31 = vpop.f32.mrb[8].mxu1 }
 0x597   :  { %v732_v32 = vadd.f32 %v2752_v56, %v731_v31  ;;  %v2323_v33 = vpop.f32.mrb[9].mxu1  ;;  %2327 = vmatmul.mubr.msk.f32.vlgmr.msra.gmra.mrb[4].mxu0 %vm245_vm6, %v736_v30  ;;  %v1401_v31 = vld [vmem:[%s2977_s4 + $0x10] sm:$0xff] }
 0x598   :  { %2336 = vmatprep.mubr.msk.f32.mxu0 %vm2581_vm5, %v2580_v46 }
 0x599   :  { %v813_v34 = vsel %vm245_vm6, %v732_v32, -inf }
 0x59a   :  { %814 = vmax.xlane.f32.xlu0 %v813_v34 }
 0x5b0   :  { %835 = vrot.lane.b32.xlu0 %v2727_v51, %s2587_s15 }
 0x5b4   :  { %1071 = vrot.lane.b32.xlu0 %v2733_v53, %s2588_s16 }
 0x5b8   :  { %1149 = vrot.lane.b32.xlu0 %v2742_v55, %s2588_s16 }
 0x627   :  { %v815_v35 = vpop.xlane.xlu0 %814 }
 0x628   :  { %v819_v36 = vsub.f32 %v732_v32, %v815_v35 }
 0x62a   :  { %v821_v37 = vmul.f32 1.442695, %v819_v36 }
 0x62b   :  { %v836_v38 = vpop.permute.xlu0 %835 }
 0x62c   :  { %2497 = vpow2.f32 %v821_v37  ;;  %2330 = vmatpush3.msra.mxu1 %v836_v38 }
 0x62d   :  { %2344 = vmatprep.subr.mxu1 %v2580_v46 }
 0x62f   :  { %v1072_v52 = vpop.permute.xlu0 %1071 }
 0x633   :  { %v1150_v57 = vpop.permute.xlu0 %1149 }
 0x636   :  { %v2498_v39 = vpop.eup %2497 }
 0x637   :  { %v825_v40 = vsel %vm245_vm6, %v2498_v39, 0.0 }
 0x638   :  { %826 = vadd.xlane.f32.xlu1 %v825_v40 }
 0x649   :  { %1151 = vrot.lane.b32.xlu1 %v2725_v49, %s2586_s28 }
 0x66a   :  { %v809_v41 = vpop.f32.mrb[4].mxu0 }
 0x66b   :  { %v810_v42 = vadd.f32 %v2758_v60, %v809_v41  ;;  %v2328_v43 = vpop.f32.mrb[5].mxu0 }
 0x66d   :  { %v816_v44 = vsel %vm245_vm6, %v810_v42, -inf }
 0x66e   :  { %817 = vmax.xlane.f32.xlu1 %v816_v44 }
 0x6c5   :  { %v827_v47 = vpop.xlane.xlu1 %826 }
 0x6c6   :  { %2499 = vrcp.f32 %v827_v47 }
 0x6c9   :  { %v1152_v54 = vpop.permute.xlu1 %1151 }
 0x6d0   :  { %v2500_v48 = vpop.eup %2499 }
 0x6d1   :  { %v833_v50 = vmul.f32 %v2500_v48, %v2498_v39 }
 0x6d3   :  { %2332 = vmatmul.mubr.msk.f32.vlgmr.msra.gmra.mrb[10].mxu1 %vm245_vm6, %v833_v50 }
 0x6d4   :  { %2345 = vmatpush3.xpose.msk.msra.mxu1 %vm245_vm6, %v1074_v45  ;;  %2346 = vmatprep.mubr.msk.f32.mxu1 %vm2581_vm5, %v2580_v46 }
 0x6d5   :  { %2349 = vmatprep.subr.mxu1 %v2580_v46 }
 0x6d7   :  { %2347 = vmatmul.mubr.msk.f32.vlgmr.msra.gmra.mrb[12].mxu1 %vm245_vm6, %v1072_v52 }
 0x6d8   :  { %2350 = vmatpush3.xpose.msk.msra.mxu1 %vm245_vm6, %v1152_v54  ;;  %2351 = vmatprep.mubr.msk.f32.mxu1 %vm2581_vm5, %v2580_v46 }
 0x6d9   :  { %2359 = vmatprep.subr.mxu1 %v2580_v46 }
 0x6db   :  { %2352 = vmatmul.mubr.msk.f32.vlgmr.msra.gmra.mrb[14].mxu1 %vm245_vm6, %v1150_v57 }
 0x6dc   :  { %2361 = vmatprep.mubr.msk.f32.mxu1 %vm2581_vm5, %v2580_v46 }
 0x6fb   :  { %v818_v58 = vpop.xlane.xlu1 %817 }
 0x6fc   :  { %v820_v59 = vsub.f32 %v810_v42, %v818_v58 }
 0x6fe   :  { %v823_v61 = vmul.f32 1.442695, %v820_v59 }
 0x700   :  { %2501 = vpow2.f32 %v823_v61 }
 0x70a   :  { %v2502_v62 = vpop.eup %2501 }
 0x70b   :  { %v828_v63 = vsel %vm245_vm6, %v2502_v62, 0.0 }
 0x70c   :  { %829 = vadd.xlane.f32.xlu0 %v828_v63 }
 0x722   :  { %911 = vrot.lane.b32.xlu0 %v2725_v49, %s2587_s15 }
 0x726   :  { %1325 = vrot.lane.b32.xlu0 %v2725_v49, %s2589_s17 }
 0x72a   :  { %1487 = vrot.lane.b32.xlu0 %v2727_v51, %s2590_s2 }
 0x72e   :  { %1565 = vrot.lane.b32.xlu0 %v2725_v49, %s2590_s2 }
 0x732   :  { %1485 = vrot.lane.b32.xlu0 %v2733_v53, %s2591_s18 }
 0x799   :  { %v830_v2 = vpop.xlane.xlu0 %829 }
 0x79a   :  { %2503 = vrcp.f32 %v830_v2 }
 0x79d   :  { %v912_v3 = vpop.permute.xlu0 %911 }
 0x79e   :  { %2335 = vmatpush3.msra.mxu0 %v912_v3 }
 0x79f   :  { %2339 = vmatprep.subr.mxu0 %v987_v16 }
 0x7a1   :  { %v1326_v4 = vpop.permute.xlu0 %1325 }
 0x7a2   :  { %2360 = vmatpush3.msra.mxu1 %v1326_v4 }
 0x7a3   :  { %2369 = vmatprep.subr.mxu1 %v2580_v46 }
 0x7a4   :  { %v2504_v5 = vpop.eup %2503 }
 0x7a5   :  { %v834_v6 = vmul.f32 %v2504_v5, %v2502_v62  ;;  %v1488_v33 = vpop.permute.xlu0 %1487 }
 0x7a6   :  { %v907_v7 = vpop.f32.mrb[10].mxu1 }
 0x7a7   :  { %v2333_v8 = vpop.f32.mrb[11].mxu1  ;;  %2337 = vmatmul.mubr.msk.f32.vlgmr.msra.gmra.mrb[6].mxu0 %vm245_vm6, %v834_v6 }
 0x7a8   :  { %2341 = vmatprep.mubr.msk.f32.mxu0 %vm245_vm6, %v907_v7  ;;  %2340 = vmatpush3.msra.mxu0 %v987_v16 }
 0x7a9   :  { %2354 = vmatprep.subr.mxu0 %v2580_v46  ;;  %v1566_v36 = vpop.permute.xlu0 %1565 }
 0x7aa   :  { %v1145_v9 = vpop.f32.mrb[12].mxu1 }
 0x7ab   :  { %v1146_v10 = vadd.f32 %v2752_v56, %v1145_v9  ;;  %v2348_v53 = vpop.f32.mrb[13].mxu1 }
 0x7ac   :  { %v1815_v53 = vld [vmem:[%s2977_s4 + $0x18] sm:$0xff] }
 0x7ad   :  { %v1227_v11 = vsel %vm245_vm6, %v1146_v10, -inf  ;;  %v1486_v38 = vpop.permute.xlu0 %1485 }
 0x7ae   :  { %1228 = vmax.xlane.f32.xlu1 %v1227_v11  ;;  %v1223_v12 = vpop.f32.mrb[14].mxu1 }
 0x7af   :  { %v1224_v13 = vadd.f32 %v2758_v60, %v1223_v12  ;;  %v2353_v14 = vpop.f32.mrb[15].mxu1 }
 0x7b0   :  { %v2174_v14 = vld [vmem:[%s2978_s5] ss:$0 sm:$0xff] }
 0x7b1   :  { %v1230_v15 = vsel %vm245_vm6, %v1224_v13, -inf  ;;  %v228_v16 = vadd.f32 %v2174_v14, %v2684_v0 }
 0x7b2   :  { %1231 = vmax.xlane.f32.xlu1 %v1230_v15  ;;  %v229_v15 = vadd.f32 %v2174_v14, %v2686_v1 }
 0x83b   :  { %v1229_v17 = vpop.xlane.xlu1 %1228 }
 0x83c   :  { %v1233_v18 = vsub.f32 %v1146_v10, %v1229_v17 }
 0x83e   :  { %v1235_v19 = vmul.f32 1.442695, %v1233_v18 }
 0x83f   :  { %v1232_v20 = vpop.xlane.xlu1 %1231 }
 0x840   :  { %2505 = vpow2.f32 %v1235_v19  ;;  %v1234_v21 = vsub.f32 %v1224_v13, %v1232_v20 }
 0x842   :  { %v1237_v22 = vmul.f32 1.442695, %v1234_v21 }
 0x844   :  { %2507 = vpow2.f32 %v1237_v22 }
 0x84a   :  { %v2506_v23 = vpop.eup %2505 }
 0x84b   :  { %v1239_v24 = vsel %vm245_vm6, %v2506_v23, 0.0 }
 0x84c   :  { %1240 = vadd.xlane.f32.xlu1 %v1239_v24 }
 0x84e   :  { %v2508_v25 = vpop.eup %2507 }
 0x84f   :  { %v1242_v26 = vsel %vm245_vm6, %v2508_v25, 0.0 }
 0x850   :  { %1243 = vadd.xlane.f32.xlu1 %v1242_v26 }
 0x861   :  { %1249 = vrot.lane.b32.xlu1 %v2727_v51, %s2589_s17 }
 0x865   :  { %1563 = vrot.lane.b32.xlu1 %v2742_v55, %s2591_s18 }
 0x87a   :  { %v983_v27 = vpop.f32.mrb[6].mxu0 }
 0x87b   :  { %v2338_v28 = vpop.f32.mrb[7].mxu0  ;;  %2342 = vmatmul.mubr.msk.f32.vlgmr.msra.gmra.mrb[2].mxu0 %vm245_vm6, %v983_v27 }
 0x87c   :  { %2356 = vmatprep.mubr.msk.f32.mxu0 %vm2581_vm5, %v2580_v46 }
 0x8d9   :  { %v1241_v29 = vpop.xlane.xlu1 %1240 }
 0x8da   :  { %2509 = vrcp.f32 %v1241_v29 }
 0x8dd   :  { %v1244_v30 = vpop.xlane.xlu1 %1243 }
 0x8de   :  { %2511 = vrcp.f32 %v1244_v30 }
 0x8e1   :  { %v1250_v32 = vpop.permute.xlu1 %1249 }
 0x8e2   :  { %2355 = vmatpush3.msra.mxu0 %v1250_v32  ;;  %v1958_v32 = vld [vmem:[%s2979_s6 + $0x8] sm:$0xff] }
 0x8e3   :  { %2364 = vmatprep.subr.mxu0 %v1401_v31 }
 0x8e4   :  { %v2510_v55 = vpop.eup %2509 }
 0x8e5   :  { %v1247_v34 = vmul.f32 %v2510_v55, %v2506_v23  ;;  %v1564_v43 = vpop.permute.xlu1 %1563 }
 0x8e7   :  { %2357 = vmatmul.mubr.msk.f32.vlgmr.msra.gmra.mrb[8].mxu0 %vm245_vm6, %v1247_v34  ;;  %v1960_v34 = vld [vmem:[%s2979_s6 + $0x18] sm:$0xff] }
 0x8e8   :  { %v2512_v35 = vpop.eup %2511  ;;  %2365 = vmatpush3.msra.mxu0 %v1401_v31  ;;  %v1957_v31 = vld [vmem:[%s2979_s6] sm:$0xff] }
 0x8e9   :  { %v1248_v37 = vmul.f32 %v2512_v35, %v2508_v25  ;;  %2374 = vmatprep.subr.mxu0 %v2580_v46  ;;  %v2432_v55 = vpack.c.bf16 %v1958_v32, %v1957_v31 }
 0x8eb   :  { %2362 = vmatmul.mubr.msk.f32.vlgmr.msra.gmra.mrb[16].mxu1 %vm245_vm6, %v1248_v37  ;;  %v2052_v37 = vld [vmem:[%s2981_s8 + $0x8] sm:$0xff] }
 0x8ec   :  { %2370 = vmatpush3.xpose.msk.msra.mxu1 %vm245_vm6, %v1488_v33  ;;  %2371 = vmatprep.mubr.msk.f32.mxu1 %vm2581_vm5, %v2580_v46  ;;  %v1959_v33 = vld [vmem:[%s2979_s6 + $0x10] sm:$0xff] }
 0x8ed   :  { %2379 = vmatprep.subr.mxu1 %v2580_v46  ;;  %v2436_v35 = vpack.c.bf16 %v1960_v34, %v1959_v33 }
 0x8ef   :  { %2372 = vmatmul.mubr.msk.f32.vlgmr.msra.gmra.mrb[18].mxu1 %vm245_vm6, %v1486_v38  ;;  %v2053_v38 = vld [vmem:[%s2981_s8 + $0x10] sm:$0xff] }
 0x8f0   :  { %2381 = vmatprep.mubr.msk.f32.mxu1 %vm2581_vm5, %v2580_v46 }
 0x9ba   :  { %v1321_v39 = vpop.f32.mrb[8].mxu0 }
 0x9bb   :  { %v2358_v40 = vpop.f32.mrb[9].mxu0  ;;  %2366 = vmatprep.mubr.msk.f32.mxu0 %vm245_vm6, %v1321_v39 }
 0x9bc   :  { %v2054_v40 = vld [vmem:[%s2981_s8 + $0x18] sm:$0xff] }
 0x9be   :  { %v1397_v41 = vpop.f32.mrb[16].mxu1 }
 0x9bf   :  { %v2363_v42 = vpop.f32.mrb[17].mxu1  ;;  %2367 = vmatmul.mubr.msk.f32.vlgmr.msra.gmra.mrb[2].mxu0 %vm245_vm6, %v1397_v41  ;;  %v2444_v41 = vpack.c.bf16 %v2054_v40, %v2053_v38 }
 0x9c0   :  { %2375 = vmatpush3.xpose.msk.msra.mxu0 %vm245_vm6, %v1566_v36  ;;  %2376 = vmatprep.mubr.msk.f32.mxu0 %vm2581_vm5, %v2580_v46  ;;  %v2051_v36 = vld [vmem:[%s2981_s8] sm:$0xff] }
 0x9c1   :  { %2384 = vmatprep.subr.mxu0 %v2580_v46  ;;  %v2440_v39 = vpack.c.bf16 %v2052_v37, %v2051_v36  ;;  %v2055_v42 = vld [vmem:[%s2981_s8 + $0x20] sm:$0xff] }
 0x9c2   :  { %v1559_v44 = vpop.f32.mrb[18].mxu1 }
 0x9c3   :  { %v1560_v45 = vadd.f32 %v2752_v56, %v1559_v44  ;;  %v2373_v47 = vpop.f32.mrb[19].mxu1  ;;  %2377 = vmatmul.mubr.msk.f32.vlgmr.msra.gmra.mrb[10].mxu0 %vm245_vm6, %v1564_v43  ;;  %v2056_v43 = vld [vmem:[%s2981_s8 + $0x28] sm:$0xff] }
 0x9c4   :  { %2386 = vmatprep.mubr.msk.f32.mxu0 %vm2581_vm5, %v2580_v46  ;;  %v2448_v44 = vpack.c.bf16 %v2056_v43, %v2055_v42 }
 0x9c5   :  { %v1641_v48 = vsel %vm245_vm6, %v1560_v45, -inf }
 0x9c6   :  { %1642 = vmax.xlane.f32.xlu0 %v1641_v48 }
 0xa53   :  { %v1643_v50 = vpop.xlane.xlu0 %1642 }
 0xa54   :  { %v1647_v52 = vsub.f32 %v1560_v45, %v1643_v50 }
 0xa56   :  { %v1649_v54 = vmul.f32 1.442695, %v1647_v52 }
 0xa58   :  { %2513 = vpow2.f32 %v1649_v54 }
 0xa62   :  { %v2514_v57 = vpop.eup %2513 }
 0xa63   :  { %v1653_v58 = vsel %vm245_vm6, %v2514_v57, 0.0 }
 0xa64   :  { %1654 = vadd.xlane.f32.xlu0 %v1653_v58 }
 0xa96   :  { %v1637_v59 = vpop.f32.mrb[10].mxu0 }
 0xa97   :  { %v1638_v56 = vadd.f32 %v2758_v60, %v1637_v59  ;;  %v2378_v61 = vpop.f32.mrb[11].mxu0 }
 0xa99   :  { %v1644_v62 = vsel %vm245_vm6, %v1638_v56, -inf }
 0xa9a   :  { %1645 = vmax.xlane.f32.xlu1 %v1644_v62 }
 0xaab   :  { %1739 = vrot.lane.b32.xlu1 %v2725_v49, %s2592_s21 }
 0xaf1   :  { %v1655_v60 = vpop.xlane.xlu0 %1654 }
 0xb27   :  { %v1646_v46 = vpop.xlane.xlu1 %1645 }
 0xb28   :  { %v1648_v63 = vsub.f32 %v1638_v56, %v1646_v46 }
 0xb2a   :  { %v1651_v2 = vmul.f32 1.442695, %v1648_v63 }
 0xb2b   :  { %v1740_v3 = vpop.permute.xlu1 %1739 }
 0xb2c   :  { %2515 = vpow2.f32 %v1651_v2  ;;  %2385 = vmatpush3.msra.mxu0 %v1740_v3 }
 0xb2d   :  { %2517 = vrcp.f32 %v1655_v60  ;;  %2389 = vmatprep.subr.mxu0 %v1815_v53 }
 0xb36   :  { %v2516_v4 = vpop.eup %2515 }
 0xb37   :  { %v1656_v5 = vsel %vm245_vm6, %v2516_v4, 0.0  ;;  %v2518_v7 = vpop.eup %2517 }
 0xb38   :  { %1657 = vadd.xlane.f32.xlu0 %v1656_v5  ;;  %v1661_v8 = vmul.f32 %v2518_v7, %v2514_v57 }
 0xb4e   :  { %1663 = vrot.lane.b32.xlu0 %v2727_v51, %s2592_s21 }
 0xbc5   :  { %v1658_v6 = vpop.xlane.xlu0 %1657 }
 0xbc6   :  { %2519 = vrcp.f32 %v1658_v6 }
 0xbc9   :  { %v1664_v9 = vpop.permute.xlu0 %1663 }
 0xbca   :  { %2380 = vmatpush3.msra.mxu1 %v1664_v9 }
 0xbcb   :  { %2382 = vmatmul.mubr.msk.f32.vlgmr.msra.gmra.mrb[20].mxu1 %vm245_vm6, %v1661_v8  ;;  %2433 = vmatprep.subr.bf16.mxu1 %v2432_v55  ;;  %v2210_v8 = vld [vmem:[%s2986_s13] ss:$0 sm:$0xff] }
 0xbcc   :  { %2435 = vmatpush3.bf16.msra.mxu1 %v2432_v55 }
 0xbcd   :  { %2437 = vmatprep.subr.bf16.mxu1 %v2436_v35 }
 0xbd0   :  { %v2520_v49 = vpop.eup %2519  ;;  %2439 = vmatpush3.bf16.msra.mxu1 %v2436_v35 }
 0xbd1   :  { %v1662_v10 = vmul.f32 %v2520_v49, %v2516_v4  ;;  %v2209_v4 = vld [vmem:[%s2985_s12] ss:$0 sm:$0xff] }
 0xbd3   :  { %2387 = vmatmul.mubr.msk.f32.vlgmr.msra.gmra.mrb[12].mxu0 %vm245_vm6, %v1662_v10 }
 0xbd4   :  { %2390 = vmatpush3.msra.mxu0 %v1815_v53 }
 0xbd5   :  { %2441 = vmatprep.subr.bf16.mxu0 %v2440_v39 }
 0xc9e   :  { %v1735_v51 = vpop.f32.mrb[20].mxu1 }
 0xc9f   :  { %v2383_v11 = vpop.f32.mrb[21].mxu1  ;;  %2391 = vmatprep.mubr.msk.f32.mxu0 %vm245_vm6, %v1735_v51  ;;  %v2057_v51 = vld [vmem:[%s2981_s8 + $0x30] sm:$0xff] }
 0xca0   :  { %v2058_v11 = vld [vmem:[%s2981_s8 + $0x38] sm:$0xff]  ;;  %s2593_s8 = smov [#allocation5]  }
 0xca1   :  { %s2157_s30 = sshll.u32 %s2593_s8, 4  ;;  %s2158_s30 = int_to_ptr.vmem [resolvable:$true] %s2157_s30 }
 0xca2   :  { %p2556_p9 = scmp.lt.s32.totalorder %s2158_s30, %s2158_s30 }
 0xca6   :  { %v1811_v12 = vpop.f32.mrb[12].mxu0 }
 0xca7   :  { %v2388_v13 = vpop.f32.mrb[13].mxu0  ;;  %2392 = vmatmul.mubr.msk.f32.vlgmr.msra.gmra.mrb[2].mxu0 %vm245_vm6, %v1811_v12  ;;  %v2452_v12 = vpack.c.bf16 %v2058_v11, %v2057_v51 }
 0xca8   :  { %2443 = vmatpush3.bf16.msra.mxu0 %v2440_v39  ;;  %v2211_v13 = vld [vmem:[%s2980_s7] ss:$0 sm:$0xff]  ;;  %s2551_s7 = scalar_lea.vmem %s2158_s30, 256 }
 0xca9   :  { %2445 = vmatprep.subr.bf16.mxu0 %v2444_v41  ;;  %p2552_p8 = scmp.ne.s32.totalorder %s2158_s30, %s2551_s7  ;;  %p2557_p10 = scmp.lt.s32.totalorder %s2551_s7, %s2551_s7 }
 0xcab   :  { %p2558_p11 = por %p2557_p10, %p2556_p9 }
 0xcac   :  { %2447 = vmatpush3.bf16.msra.mxu0 %v2444_v41 }
 0xcad   :  { %2449 = vmatprep.subr.bf16.mxu0 %v2448_v44  ;;  %p2559_p12 = pnand %p2558_p11, %p2552_p8 }
 0xcb0   :  { %2451 = vmatpush3.bf16.msra.mxu0 %v2448_v44 }
 0xcb1   :  { %2453 = vmatprep.subr.bf16.mxu0 %v2452_v12 }
 0xcb4   :  { %2455 = vmatpush3.bf16.msra.mxu0 %v2452_v12 }
 0xd7a   :  { %v2393_v17 = vpop.f32.mrb[2].mxu0 }
 0xd7b   :  { %v2892_v18 = vadd.f32 %v2393_v17, %v229_v15  ;;  %v1888_v19 = vpop.f32.mrb[3].mxu0 }
 0xd7c   :  { %v2894_v20 = vadd.f32 %v1888_v19, %v228_v16 }
 0xd7d   :  { %v1904_v21 = vsel %vm68_vm0, %v2892_v18, 0.0 }
 0xd7e   :  { %1905 = vadd.xlane.f32.xlu0 %v1904_v21  ;;  %v1901_v22 = vsel %vm68_vm0, %v2894_v20, 0.0 }
 0xd7f   :  { %1902 = vadd.xlane.f32.xlu1 %v1901_v22  ;;  %v2214_v22 = vld [vmem:[%s2982_s9] ss:$0 sm:$0xff] }
 0xe0b   :  { %v1906_v23 = vpop.xlane.xlu0 %1905 }
 0xe0c   :  { %v1908_v24 = vmul.f32 0.03125, %v1906_v23  ;;  %v1903_v25 = vpop.xlane.xlu1 %1902 }
 0xe0d   :  { %v1907_v1 = vmul.f32 0.03125, %v1903_v25 }
 0xe0e   :  { %v1910_v0 = vsub.f32 %v2892_v18, %v1908_v24 }
 0xe0f   :  { %v1909_v26 = vsub.f32 %v2894_v20, %v1907_v1 }
 0xe10   :  { %v1912_v27 = vmul.f32 %v1910_v0, %v1910_v0  ;;  %v1942_v5 = vmul.f32 %v2209_v4, %v1910_v0 }
 0xe11   :  { %v1911_v28 = vmul.f32 %v1909_v26, %v1909_v26  ;;  %v1941_v6 = vmul.f32 %v2209_v4, %v1909_v26 }
 0xe12   :  { %v1916_v29 = vsel %vm68_vm0, %v1912_v27, 0.0 }
 0xe13   :  { %1917 = vadd.xlane.f32.xlu1 %v1916_v29  ;;  %v1913_v30 = vsel %vm68_vm0, %v1911_v28, 0.0 }
 0xe14   :  { %1914 = vadd.xlane.f32.xlu0 %v1913_v30 }
 0xea0   :  { %v1918_v45 = vpop.xlane.xlu1 %1917 }
 0xea1   :  { %v1920_v47 = vmul.f32 0.032258064, %v1918_v45  ;;  %v1915_v48 = vpop.xlane.xlu0 %1914 }
 0xea2   :  { %v1919_v50 = vmul.f32 0.032258064, %v1915_v48 }
 0xea3   :  { %2521 = vrsqrt.f32 %v1920_v47  ;;  %vm1930_vm7 = vcmp.eq.f32.partialorder %v1920_v47, inf  ;;  %v1933_v58 = vand.u32 2147483648, %v1920_v47  ;;  %vm1932_vm8 = vcmp.eq.f32.partialorder %v1920_v47, 0.0 }
 0xea4   :  { %2523 = vrsqrt.f32 %v1919_v50  ;;  %vm1923_vm9 = vcmp.eq.f32.partialorder %v1919_v50, inf  ;;  %v1926_v61 = vand.u32 2147483648, %v1919_v50  ;;  %vm1925_vm10 = vcmp.eq.f32.partialorder %v1919_v50, 0.0 }
 0xead   :  { %v2522_v52 = vpop.eup %2521 }
 0xeae   :  { %v2524_v54 = vpop.eup %2523  ;;  %v1929_v57 = vmul.f32 %v2522_v52, %v1920_v47 }
 0xeaf   :  { %v1922_v59 = vmul.f32 %v2524_v54, %v1919_v50 }
 0xeb0   :  { %v1931_v56 = vsel %vm1930_vm7, %v1920_v47, %v1929_v57 }
 0xeb1   :  { %v1934_v62 = vsel %vm1932_vm8, %v1933_v58, %v1931_v56  ;;  %v1924_v46 = vsel %vm1923_vm9, %v1919_v50, %v1922_v59 }
 0xeb2   :  { %v1944_v63 = vadd.f32 1e-06, %v1934_v62  ;;  %v1927_v2 = vsel %vm1925_vm10, %v1926_v61, %v1924_v46 }
 0xeb3   :  { %v1943_v3 = vadd.f32 1e-06, %v1927_v2 }
 0xeb4   :  { %2525 = vrcp.f32 %v1944_v63 }
 0xeb5   :  { %2527 = vrcp.f32 %v1943_v3 }
 0xebe   :  { %v2526_v60 = vpop.eup %2525 }
 0xebf   :  { %v2528_v7 = vpop.eup %2527  ;;  %v1948_v9 = vmul.f32 %v2526_v60, %v1942_v5 }
 0xec0   :  { %v1946_v49 = vmul.f32 %v2528_v7, %v1941_v6 }
 0xec1   :  { %v1956_v53 = vadd.f32 %v2210_v8, %v1948_v9 }
 0xec2   :  { %v1955_v10 = vadd.f32 %v2210_v8, %v1946_v49 }
 0xec4   :  { %2402 = vmatprep.mubr.msk.f32.mxu1 %vm68_vm0, %v1955_v10 }
 0xec5   :  { %2403 = vmatmul.mubr.msk.f32.vlgmr.msra.gmra.mrb[22].mxu1 %vm68_vm0, %v1956_v53 }
 0xf98   :  { %v2404_v14 = vpop.f32.mrb[22].mxu1 }
 0xf99   :  { %v2046_v15 = vadd.f32 %v2404_v14, %v2211_v13  ;;  %v2040_v16 = vpop.f32.mrb[23].mxu1 }
 0xf9a   :  { %v2041_v17 = vadd.f32 %v2211_v13, %v2040_v16 }
 0xf9b   :  { %v2050_v21 = vmax.f32 %v2046_v15, 0.0 }
 0xf9c   :  { %v2049_v19 = vmax.f32 %v2041_v17, 0.0 }
 0xf9e   :  { %2421 = vmatprep.mubr.msk.f32.mxu0 %vm2066_vm11, %v2049_v19 }
 0xf9f   :  { %2422 = vmatmul.mubr.msk.f32.vlgmr.msra.gmra.mrb[14].mxu0 %vm2066_vm11, %v2050_v21 }
0x1072   :  { %v2423_v23 = vpop.f32.mrb[14].mxu0 }
0x1073   :  { %v2145_v24 = vadd.f32 %v2423_v23, %v2214_v22  ;;  %v2139_v25 = vpop.f32.mrb[15].mxu0 }
0x1074   :  { %v2140_v1 = vadd.f32 %v2214_v22, %v2139_v25 }
0x1075   :  { %v2149_v0 = vadd.f32 %v2892_v18, %v2145_v24 }
0x1076   :  { %v2148_v26 = vadd.f32 %v2894_v20, %v2140_v1 }
0x1077   :  { %2151 = vst.msk [vmem:[#allocation5 + $0x8] sm:$0xff] %vm68_vm0, %v2149_v0 }
0x1078   :  { %2150 = vst.msk [vmem:[#allocation5] sm:$0xff] %vm68_vm0, %v2148_v26 }
0x1079   :  { %2562 = shalt.err (!%p2559_p12)
}
0x107a   :  { %s2563_s16 = scalar_lea.hbm %s2987_s14, 256 }
0x107b   :  { %p2564_p13 = scmp.ne.s32.totalorder %s2987_s14, %s2563_s16  ;;  %p2567_p0 = scmp.lt.u32.totalorder %s2563_s16, %s2987_s14 }
0x107d   :  { %p2569_p1 = pnand %p2567_p0, %p2564_p13 }
0x107f   :  { %2572 = shalt.err (!%p2569_p1)
}
0x1080   :  { %2163 = dma.vmem_to_hbm [thread:$0]  %s2158_s30, 256, %s2987_s14, [#allocation4], %s2578_s23, %s2578_s23, %s2579_s24  }
0x1081   :  { %2575 = dma.done.wait [#allocation4], 256  }
0x1082   :  { %2576 = vsyncadd [#allocation4], 4294967040 }
0x1083   :  { %2167 = vsyncpa [#allocation3], 1 }
0x1084   :  { %2168 = vsyncpa [#allocation4], 1 }

</bundles_post_ra>
